<compile_context>
chip_gen: v7x
topology: tpu7x:2x2x1
jax: 0.10.0
libtpu: 0.0.40
codegen_flags: <defaults>
</compile_context>

<pallas_src>
import math

import jax
import jax.numpy as jnp
import numpy as np
from jax.experimental import pallas as pl
from jax.experimental.pallas import tpu as pltpu


# ---------------------------------------------------------------------------
# One-off probe: does pltpu.roll follow jnp.roll's convention (y[i]=x[i-shift])
# on the sublane / lane axes?  Border masking depends on the direction, so we
# detect it once and bake the matching static shifts into the kernel.
# ---------------------------------------------------------------------------
_ROLL_CONV = None


def _roll_conventions():
    global _ROLL_CONV
    if _ROLL_CONV is None:
        def probe(x_ref, a_ref, b_ref):
            a_ref[...] = pltpu.roll(x_ref[...], 1, axis=0)
            b_ref[...] = pltpu.roll(x_ref[...], 1, axis=1)

        x = np.arange(8 * 128, dtype=np.float32).reshape(8, 128)
        a, b = pl.pallas_call(
            probe,
            out_shape=(jax.ShapeDtypeStruct((8, 128), jnp.float32),
                       jax.ShapeDtypeStruct((8, 128), jnp.float32)),
        )(jnp.asarray(x))
        a = np.asarray(jax.device_get(a))
        b = np.asarray(jax.device_get(b))
        _ROLL_CONV = (bool(a[1, 0] == x[0, 0]),   # sublane axis matches jnp.roll
                      bool(b[0, 1] == x[0, 0]))   # lane axis matches jnp.roll
    return _ROLL_CONV


def _shift(amount, size, matches_jnp):
    """Static shift giving jnp.roll(x, amount) semantics with pltpu.roll."""
    amount = amount % size
    return amount if matches_jnp else (-amount) % size


def _choose_fold(h, w):
    """Rows-per-lane-group g (g | h): prefer g*w an exact multiple of 128."""
    best = 1
    for g in range(1, h + 1):
        if h % g:
            continue
        if (g * w) % 128 == 0:
            return g
        if g * w <= 128:
            best = g
    return best


def _make_kernel(shifts, tail_rows):
    sh_lane_up, sh_sub_up, sh_lane_dn, sh_sub_dn, sh_left, sh_right = shifts

    def kernel(x_ref, d_ref, row_ref, lane_ref, o_ref):
        def roll(v, shift, axis):
            return pltpu.roll(v, shift, axis=axis) if shift else v

        x = x_ref[...].astype(jnp.float32)   # native-dtype DMA, cast in VMEM
        d = d_ref[...].astype(jnp.float32)
        rows = x.shape[0]

        if tail_rows is not None:
            # Ragged last block: rows past the real batch hold unspecified HBM
            # data; zero them so nothing (incl. NaN) leaks into the sum.
            limit = jnp.where(pl.program_id(0) == pl.num_programs(0) - 1,
                              tail_rows, rows)
            valid = jax.lax.broadcasted_iota(jnp.int32, (rows, 1), 0) < limit
            x = jnp.where(valid, x, 0.0)
            d = jnp.where(valid, d, 0.0)

        # sigmoid(100*(x-0.5)) expressed through tanh (EUP, no f32 divide);
        # the "< 0.5" threshold is equivalent to x < 0.5 (sigmoid is monotone).
        s = 0.5 + 0.5 * jnp.tanh(50.0 * (x - 0.5))
        s = jnp.where(x < 0.5, s, 0.0)

        lm = lane_ref[...]
        left_ok, right_ok = lm[0:1, :], lm[1:2, :]
        up_same = lm[2:3, :] > 0.5     # up-neighbour lives in the same folded row
        dn_same = lm[3:4, :] > 0.5     # down-neighbour lives in the same folded row
        up_ok = row_ref[:, 0:1]        # folded row is not its image's top row
        dn_ok = row_ref[:, 1:2]        # folded row is not its image's bottom row

        # Cross-shaped Laplacian neighbours via XLU rolls + resident edge masks.
        t_up = roll(s, sh_lane_up, 1)
        up = jnp.where(up_same, t_up, roll(t_up, sh_sub_up, 0) * up_ok)
        t_dn = roll(s, sh_lane_dn, 1)
        dn = jnp.where(dn_same, t_dn, roll(t_dn, sh_sub_dn, 0) * dn_ok)
        lf = roll(s, sh_left, 1) * left_ok
        rt = roll(s, sh_right, 1) * right_ok

        lap = (up + dn) + (lf + rt) - 4.0 * s
        # s < 0.5 everywhere => lap in [-2, 2], so clamp(0, 255) == relu.
        contours = jnp.tanh(jnp.maximum(lap, 0.0))

        part = jnp.sum(contours * d, axis=1, keepdims=True)   # lane reduce
        tot = jnp.sum(part, axis=0, keepdims=True)            # sublane reduce
        o_ref[...] = jnp.broadcast_to(tot, o_ref.shape)       # lane-dense store

    return kernel


def contour_loss(outputs, dist_maps, *, vmem_tile_bytes=2 * 1024 * 1024):
    """Pallas implementation of ContourLoss.forward for (B, H, W) inputs."""
    assert outputs.shape == dist_maps.shape and outputs.ndim == 3
    b, h, w = outputs.shape

    # Fold g image rows into the lane axis (pure reshape, no HBM shuffle).
    g = _choose_fold(h, w)
    hg = h // g
    gw = g * w
    x2 = outputs.reshape(b * hg, gw)
    d2 = dist_maps.reshape(b * hg, gw)

    # Whole images per grid step, sized by the f32 working set per tile.
    tb = max(1, vmem_tile_bytes // (h * w * 4))
    if tb >= b:
        tb = b                                     # single block == full array
    else:
        itemsize = outputs.dtype.itemsize
        align = max(8, 32 // max(1, itemsize))     # sublane multiple for dtype
        m = align // math.gcd(hg, align)
        tb = max(m, (tb // m) * m)
        tb = min(tb, b)
    num_blocks = -(-b // tb)
    rb = tb * hg
    tail = b % tb
    tail_rows = tail * hg if (num_blocks > 1 and tail) else None
    # TODO(synk): a single image larger than the VMEM budget would need spatial
    # tiling with halo rows instead of whole-image blocks.

    # Small resident validity masks (kept in VMEM across all grid steps).
    frid = np.arange(rb) % hg
    rowmask = jnp.asarray(
        np.stack([frid != 0, frid != hg - 1], axis=1).astype(np.float32))
    c = np.arange(gw)
    lanemask = jnp.asarray(
        np.stack([(c % w) != 0,            # left neighbour exists
                  (c % w) != w - 1,        # right neighbour exists
                  c >= w,                  # up neighbour in same folded row
                  c < (g - 1) * w],        # down neighbour in same folded row
                 axis=0).astype(np.float32))

    sub_jnp, lane_jnp = _roll_conventions()
    shifts = (_shift(w, gw, lane_jnp), _shift(1, rb, sub_jnp),
              _shift(-w, gw, lane_jnp), _shift(-1, rb, sub_jnp),
              _shift(1, gw, lane_jnp), _shift(-1, gw, lane_jnp))

    partials = pl.pallas_call(
        _make_kernel(shifts, tail_rows),
        out_shape=jax.ShapeDtypeStruct((num_blocks, 1, 128), jnp.float32),
        grid=(num_blocks,),
        in_specs=[
            pl.BlockSpec((rb, gw), lambda i: (i, 0)),
            pl.BlockSpec((rb, gw), lambda i: (i, 0)),
            pl.BlockSpec((rb, 2), lambda i: (0, 0)),   # resident row mask
            pl.BlockSpec((4, gw), lambda i: (0, 0)),   # resident lane mask
        ],
        out_specs=pl.BlockSpec((1, 1, 128), lambda i: (i, 0, 0)),
        compiler_params=pltpu.CompilerParams(
            dimension_semantics=("parallel",),         # independent blocks
            vmem_limit_bytes=48 * 1024 * 1024,         # safe on v7x (64 MiB)
        ),
    )(x2, d2, rowmask, lanemask)

    # Per-block partials tree-summed in JAX; divide by the ORIGINAL batch size.
    return jnp.sum(partials[:, 0, 0]) / jnp.float32(b)


# ---------------- reference (plain JAX, mirrors the PyTorch module) ----------

def _reference(outputs, dist_maps):
    s = 1.0 / (1.0 + jnp.exp(-100.0 * (outputs - 0.5)))
    s = s * (s < 0.5)
    sp = jnp.pad(s, ((0, 0), (1, 1), (1, 1)))
    lap = (sp[:, :-2, 1:-1] + sp[:, 2:, 1:-1] + sp[:, 1:-1, :-2]
           + sp[:, 1:-1, 2:] - 4.0 * s)
    contours = jnp.tanh(jnp.clip(lap, 0.0, 255.0))
    return jnp.sum(contours * dist_maps) / outputs.shape[0]


if __name__ == "__main__":
    key = jax.random.PRNGKey(0)
    k1, k2, k3, k4 = jax.random.split(key, 4)

    # Main case: 16x16 images lane-folded to (8, 128), whole batch in one block.
    B, H, W = 4, 16, 16
    outputs = jax.random.uniform(k1, (B, H, W), dtype=jnp.float32)
    dist_maps = jax.random.uniform(k2, (B, H, W), dtype=jnp.float32) * 5.0

    loss = jax.block_until_ready(contour_loss(outputs, dist_maps))
    ref = jax.block_until_ready(_reference(outputs, dist_maps))
    assert jnp.allclose(loss, ref, rtol=1e-4, atol=1e-4), (loss, ref)
    # The PyTorch module's `assert dist >= 0`, checked host-side here.
    assert float(loss) >= 0.0

    # Multi-block + ragged-tail path (forced tiny tile -> 2 blocks, 1 tail img).
    B2 = 5
    outputs2 = jax.random.uniform(k3, (B2, H, W), dtype=jnp.float32)
    dist_maps2 = jax.random.uniform(k4, (B2, H, W), dtype=jnp.float32) * 5.0
    loss2 = jax.block_until_ready(
        contour_loss(outputs2, dist_maps2, vmem_tile_bytes=1024))
    ref2 = jax.block_until_ready(_reference(outputs2, dist_maps2))
    assert jnp.allclose(loss2, ref2, rtol=1e-4, atol=1e-4), (loss2, ref2)

    print("KERNEL_OK")
</pallas_src>

<mosaic_0001>
module attributes {stable_mosaic.version = 11 : i64} {
  func.func @probe(%arg0: memref<8x128xf32, #tpu.memory_space<vmem>>, %arg1: memref<8x128xf32, #tpu.memory_space<vmem>>, %arg2: memref<8x128xf32, #tpu.memory_space<vmem>>) attributes {dimension_semantics = [], scalar_prefetch = 0 : i64, scratch_operands = 0 : i64, tpu.core_type = #tpu.core_type<tc>} {
    %c0 = arith.constant 0 : index
    %c0_0 = arith.constant 0 : index
    %0 = vector.load %arg0[%c0, %c0_0] : memref<8x128xf32, #tpu.memory_space<vmem>>, vector<8x128xf32>
    %c1_i32 = arith.constant 1 : i32
    %1 = tpu.dynamic_rotate %0 by %c1_i32 dim 0 : vector<8x128xf32>, i32 -> vector<8x128xf32>
    %c0_1 = arith.constant 0 : index
    %c0_2 = arith.constant 0 : index
    %2 = vector.load %arg1[%c0_1, %c0_2] : memref<8x128xf32, #tpu.memory_space<vmem>>, vector<8x128xf32>
    tpu.vector_store %arg1[%c0_1, %c0_2], %1 {strides = array<i32>} : memref<8x128xf32, #tpu.memory_space<vmem>>, vector<8x128xf32>,
    %c0_3 = arith.constant 0 : index
    %c0_4 = arith.constant 0 : index
    %3 = vector.load %arg0[%c0_3, %c0_4] : memref<8x128xf32, #tpu.memory_space<vmem>>, vector<8x128xf32>
    %c1_i32_5 = arith.constant 1 : i32
    %4 = tpu.dynamic_rotate %3 by %c1_i32_5 dim 1 : vector<8x128xf32>, i32 -> vector<8x128xf32>
    %c0_6 = arith.constant 0 : index
    %c0_7 = arith.constant 0 : index
    %5 = vector.load %arg2[%c0_6, %c0_7] : memref<8x128xf32, #tpu.memory_space<vmem>>, vector<8x128xf32>
    tpu.vector_store %arg2[%c0_6, %c0_7], %4 {strides = array<i32>} : memref<8x128xf32, #tpu.memory_space<vmem>>, vector<8x128xf32>,
    return
  }
}

</mosaic_0001>

<bundles_post_ra>
// kernel: tpu_custom_call.1
= control target key start
LH: loop header
LB: loop body
LE: loop exit
PB: predicated region body
PF: predicated region fallthrough
CT: control target
= control target key end

     0   :  { %8 = vsyncpa [#allocation3], 0  ;;  %s191_s0 = inlined_call_operand.hbm [shape: f32[8,128], index: 0, kind: input, shape index: {}]   ;;  %s192_s1 = inlined_call_operand.hbm [shape: f32[8,128], index: 1, kind: output, shape index: {0}]   ;;  %s193_s2 = inlined_call_operand.hbm [shape: f32[8,128], index: 2, kind: output, shape index: {1}]  }
   0x1   :  { %9 = vsyncpa [#allocation4], 0 }
   0x2   :  { %10 = vsyncpa [#allocation7], 0  ;;  %s136_s9 = smov [#allocation2]   ;;  %s64_s13 = scalar_lea.hbm %s191_s0, 128 }
   0x3   :  { %s17_s10 = sshll.u32 %s136_s9, 4  ;;  %p65_p0 = scmp.ne.s32.totalorder %s191_s0, %s64_s13  ;;  %s18_s10 = int_to_ptr.vmem [resolvable:$true] %s17_s10 }
   0x4   :  { %p68_p1 = scmp.lt.u32.totalorder %s64_s13, %s191_s0 }
   0x6   :  { %p70_p2 = pnand %p68_p1, %p65_p0 }
   0x8   :  { %73 = shalt.err (!%p70_p2)
}
   0x9   :  { %s74_s18 = scalar_lea.vmem %s18_s10, 128  ;;  %p79_p4 = scmp.lt.s32.totalorder %s18_s10, %s18_s10 }
   0xa   :  { %p75_p3 = scmp.ne.s32.totalorder %s18_s10, %s74_s18  ;;  %p80_p5 = scmp.lt.s32.totalorder %s74_s18, %s74_s18 }
   0xc   :  { %p81_p6 = por %p80_p5, %p79_p4 }
   0xe   :  { %p82_p7 = pnand %p81_p6, %p75_p3 }
  0x10   :  { %85 = shalt.err (!%p82_p7)
}
  0x11   :  { %20 = dma.hbm_to_vmem [thread:$0]  %s191_s0, 128, %s18_s10, [#allocation3]  }
  0x12   :  { %130 = dma.done.wait [#allocation3], 128  }
  0x13   :  { %131 = vsyncadd [#allocation3], 4294967168  ;;  %s137_s21 = smov [#allocation5]   ;;  %v27_v0 = vld [vmem:[#allocation2] sm:$0xff]  ;;  %s138_s23 = smov 1  }
  0x14   :  { %s37_s22 = sshll.u32 %s137_s21, 4  ;;  %28 = vrot.lane.b32.xlu0 %v27_v0, %s138_s23  ;;  %v25_v1 = vrot.slane %v27_v0, 7  ;;  %s38_s22 = int_to_ptr.vmem [resolvable:$true] %s37_s22 }
  0x15   :  { %s86_s24 = scalar_lea.vmem %s38_s22, 128  ;;  %p91_p9 = scmp.lt.s32.totalorder %s38_s22, %s38_s22 }
  0x16   :  { %26 = vst [vmem:[#allocation5] sm:$0xff] %v25_v1  ;;  %p87_p8 = scmp.ne.s32.totalorder %s38_s22, %s86_s24  ;;  %p92_p10 = scmp.lt.s32.totalorder %s86_s24, %s86_s24 }
  0x18   :  { %p93_p11 = por %p92_p10, %p91_p9 }
  0x1a   :  { %p94_p12 = pnand %p93_p11, %p87_p8 }
  0x1c   :  { %97 = shalt.err (!%p94_p12)
}
  0x1d   :  { %s98_s0 = scalar_lea.hbm %s192_s1, 128 }
  0x1e   :  { %p99_p13 = scmp.ne.s32.totalorder %s192_s1, %s98_s0  ;;  %p102_p0 = scmp.lt.u32.totalorder %s98_s0, %s192_s1 }
  0x20   :  { %p104_p1 = pnand %p102_p0, %p99_p13 }
  0x22   :  { %107 = shalt.err (!%p104_p1)
}
  0x23   :  { %40 = dma.vmem_to_hbm [thread:$0]  %s38_s22, 128, %s192_s1, [#allocation4]  }
  0x24   :  { %s139_s5 = smov [#allocation6]  }
  0x25   :  { %s47_s6 = sshll.u32 %s139_s5, 4  ;;  %s48_s6 = int_to_ptr.vmem [resolvable:$true] %s47_s6 }
  0x26   :  { %s108_s7 = scalar_lea.vmem %s48_s6, 128  ;;  %p113_p3 = scmp.lt.s32.totalorder %s48_s6, %s48_s6 }
  0x27   :  { %p109_p2 = scmp.ne.s32.totalorder %s48_s6, %s108_s7  ;;  %p114_p4 = scmp.lt.s32.totalorder %s108_s7, %s108_s7 }
  0x29   :  { %p115_p5 = por %p114_p4, %p113_p3 }
  0x2b   :  { %p116_p6 = pnand %p115_p5, %p109_p2 }
  0x86   :  { %v29_v2 = vpop.permute.xlu0 %28 }
  0x87   :  { %30 = vst [vmem:[#allocation6] sm:$0xff] %v29_v2 }
  0x88   :  { %119 = shalt.err (!%p116_p6)
}
  0x89   :  { %s120_s10 = scalar_lea.hbm %s193_s2, 128 }
  0x8a   :  { %p121_p7 = scmp.ne.s32.totalorder %s193_s2, %s120_s10  ;;  %p124_p8 = scmp.lt.u32.totalorder %s120_s10, %s193_s2 }
  0x8c   :  { %p126_p9 = pnand %p124_p8, %p121_p7 }
  0x8e   :  { %129 = shalt.err (!%p126_p9)
}
  0x8f   :  { %50 = dma.vmem_to_hbm [thread:$0]  %s48_s6, 128, %s193_s2, [#allocation7]  }
  0x90   :  { %132 = dma.done.wait [#allocation4], 128  }
  0x91   :  { %133 = vsyncadd [#allocation4], 4294967168 }
  0x92   :  { %134 = dma.done.wait [#allocation7], 128  }
  0x93   :  { %135 = vsyncadd [#allocation7], 4294967168 }
  0x94   :  { %57 = vsyncpa [#allocation3], 1 }
  0x95   :  { %58 = vsyncpa [#allocation4], 1 }
  0x96   :  { %59 = vsyncpa [#allocation7], 1 }

</bundles_post_ra>
